<compile_context>
chip_gen: v6e
topology: v6e:2x2x1
jax: 0.10.0
libtpu: 0.0.40
codegen_flags: <defaults>
</compile_context>

<pallas_src>
import functools

import jax
import jax.numpy as jnp
from jax.experimental import pallas as pl
from jax.experimental.pallas import tpu as pltpu


# ----------------------------------------------------------------------------
# Small helpers.
# ----------------------------------------------------------------------------
def _round_up(a, b):
    return -(-a // b) * b


def _vmem_capacity_bytes():
    """Per-TensorCore VMEM capacity (generation-aware), conservative fallback."""
    try:
        cap = int(pltpu.get_tpu_info().vmem_capacity_bytes)
        if cap > 0:
            return cap
    except Exception:
        pass
    return 64 * 1024 * 1024  # v7x per-TC size: a safe lower bound on all gens


def _fold_params(w_fc, b_fc, w_fcs, b_fcs, G):
    """Fold fc followed by fcs[m] into one (2*C*G, C*G) mat-vec + merged bias.

    Valid because forward() applies fcs[m] directly to fc's output (no BN /
    ReLU in between).  The sublane fold factor G is absorbed here as well:
    columns are repeated G times (the pooled sum arrives split across the G
    folded rows of each channel) and rows are repeated G times (so the
    softmax output is already laid out per folded row and the kernels never
    reshape across sublanes).
    """
    M, C, d = w_fcs.shape
    hi = jax.lax.Precision.HIGHEST
    w_m = jnp.einsum('dc,mkd->mck', w_fc, w_fcs, precision=hi)        # (M, C_in, C_out)
    b_m = jnp.einsum('d,mkd->mk', b_fc, w_fcs, precision=hi) + b_fcs  # (M, C)
    w_comb = jnp.transpose(w_m, (0, 2, 1)).reshape(M * C, C)          # (2C, C)
    b_comb = b_m.reshape(M * C, 1)                                    # (2C, 1)
    w_in = jnp.repeat(w_comb, G, axis=1)                              # (2C, C*G)
    w_gg = jnp.concatenate([jnp.repeat(w_in[:C], G, axis=0),
                            jnp.repeat(w_in[C:], G, axis=0)], axis=0)     # (2CG, CG)
    b_gg = jnp.concatenate([jnp.repeat(b_comb[:C], G, axis=0),
                            jnp.repeat(b_comb[C:], G, axis=0)], axis=0)   # (2CG, 1)
    return w_gg.astype(jnp.float32), b_gg.astype(jnp.float32)


# ----------------------------------------------------------------------------
# In-kernel attention helper (fused path only; the two-phase path does this
# tiny O(C^2) step in plain XLA between the two pallas_calls).
# ----------------------------------------------------------------------------
def _attention_from_sum(s_sum, w, b, *, Cg, inv_hw):
    """s_sum: (Cg, 1) f32 spatial sum of (x + y) in the sublane-folded layout.

    w: (2*Cg, Cg) folded fc∘fcs weights; b: (2*Cg, 1) folded bias.  The pooled
    vector is broadcast across a 128-lane tile so the mat-vec is one small
    MXU push (all lanes identical); lane 0 of the result is kept.  Returns
    the branch-0 attention (Cg, 1); branch-1 is 1 - att0.
    """
    s = jnp.broadcast_to(s_sum * inv_hw, (s_sum.shape[0], 128))
    logits = jnp.dot(w, s, preferred_element_type=jnp.float32)[:, :1] + b
    a0 = logits[:Cg, :]
    a1 = logits[Cg:, :]
    mx = jnp.maximum(a0, a1)
    e0 = jnp.exp(a0 - mx)
    e1 = jnp.exp(a1 - mx)
    return e0 / (e0 + e1)


# ----------------------------------------------------------------------------
# Kernels.
# ----------------------------------------------------------------------------
def _skconv_fused_kernel(x_ref, y_ref, w_ref, b_ref, o_ref, *, Cg, inv_hw):
    """Single-block fused kernel: GAP + folded fc/fcs + softmax + blend."""
    x = x_ref[...]
    y = y_ref[...]
    u = x.astype(jnp.float32) + y.astype(jnp.float32)
    att0 = _attention_from_sum(jnp.sum(u, axis=1, keepdims=True),
                               w_ref[...], b_ref[...], Cg=Cg, inv_hw=inv_hw)
    # out = att0*x + (1-att0)*y  ==  y + att0*(x - y): one fewer VPU multiply.
    o_ref[...] = (y + att0 * (x.astype(jnp.float32) - y.astype(jnp.float32))
                  ).astype(o_ref.dtype)
    # TODO(synk): near the VMEM ceiling a streamed-resident variant
    # (grid=(2, n_tiles) with a persistent VMEM scratch) would overlap the
    # input/output DMAs with the GAP/blend compute at the same 3x traffic.


def _gap_kernel(x_ref, y_ref, s_ref):
    """Phase 1: accumulate a partial spatial sum of (x + y) per parallel slice."""
    @pl.when(pl.program_id(1) == 0)
    def _init():
        s_ref[...] = jnp.zeros_like(s_ref)
    u = x_ref[...].astype(jnp.float32) + y_ref[...].astype(jnp.float32)
    s_ref[...] += jnp.sum(u, axis=1, keepdims=True)[None]


def _blend_kernel(att_ref, x_ref, y_ref, o_ref):
    """Phase 2: streaming blend  out = y + att0 * (x - y)."""
    a = att_ref[...]                                       # (Cg, 1) f32
    x = x_ref[...]
    y = y_ref[...]
    o_ref[...] = (y + a * (x.astype(jnp.float32) - y.astype(jnp.float32))
                  ).astype(o_ref.dtype)


# ----------------------------------------------------------------------------
# Host-side wrapper.
# ----------------------------------------------------------------------------
def skconv_forward(x, y, w_fc, b_fc, w_fcs, b_fcs, *,
                   force_two_phase=False, hw_tile=None):
    """x, y: (1, C, H, W) NCHW.  Returns (1, C, H, W)."""
    N, C, H, W = x.shape
    assert N == 1, "SKConv.forward's squeeze/unsqueeze(0) dance assumes batch=1"
    M = w_fcs.shape[0]
    assert M == 2, "forward() blends exactly two feature maps (x, y)"
    hw = H * W
    dt = x.dtype
    itemsize = dt.itemsize

    # Sublane packing: fold part of HW into the channel dim when C under-fills
    # the vreg sublanes (8 for 4-byte dtypes, 16 for 2-byte dtypes).
    min_sub = 8 if itemsize >= 4 else 16
    G = -(-min_sub // C) if C < min_sub else 1
    G = min(G, max(1, hw // 128))            # keep >= one vreg row of lanes
    Cg = C * G

    # NCHW (N=1) -> (C, HW) is a pure reshape of the contiguous layout.  The
    # optional zero-pad to a multiple of G keeps the fold a pure reshape too
    # (zeros don't perturb the GAP sum; padded outputs are sliced off).
    hw_al = _round_up(hw, G)
    x2 = x.reshape(C, hw)
    y2 = y.reshape(C, hw)
    if hw_al != hw:
        x2 = jnp.pad(x2, ((0, 0), (0, hw_al - hw)))
        y2 = jnp.pad(y2, ((0, 0), (0, hw_al - hw)))
    hw_g = hw_al // G
    x2 = x2.reshape(Cg, hw_g)
    y2 = y2.reshape(Cg, hw_g)

    w_gg, b_gg = _fold_params(w_fc, b_fc, w_fcs, b_fcs, G)
    inv_hw = 1.0 / hw

    # Generation-aware VMEM budgeting.
    vmem_cap = _vmem_capacity_bytes()
    fused_budget = int(0.70 * vmem_cap)       # ~45 MiB on v7x, ~90 MiB on v5e/v6e
    block_bytes = Cg * hw_g * itemsize
    # Live fused footprint: x/y/out blocks (assume double-buffered even at
    # grid=(1,)) + ~3 f32-sized temporaries + the tiny folded parameters.
    fused_bytes = (6 * block_bytes + 3 * Cg * hw_g * 4
                   + 4 * (2 * Cg * Cg + 2 * Cg))
    use_fused = (not force_two_phase) and fused_bytes <= fused_budget

    if use_fused:
        out2 = pl.pallas_call(
            functools.partial(_skconv_fused_kernel, Cg=Cg, inv_hw=inv_hw),
            out_shape=jax.ShapeDtypeStruct((Cg, hw_g), dt),
            grid=(1,),
            in_specs=[
                pl.BlockSpec((Cg, hw_g), lambda i: (0, 0)),
                pl.BlockSpec((Cg, hw_g), lambda i: (0, 0)),
                pl.BlockSpec((2 * Cg, Cg), lambda i: (0, 0)),
                pl.BlockSpec((2 * Cg, 1), lambda i: (0, 0)),
            ],
            out_specs=pl.BlockSpec((Cg, hw_g), lambda i: (0, 0)),
            compiler_params=pltpu.CompilerParams(
                vmem_limit_bytes=fused_budget),
        )(x2, y2, w_gg, b_gg)
    else:
        # --- per-phase tile selection (multiples of 128 lanes) ---------------
        phase_budget = min(int(0.35 * vmem_cap), 28 * 1024 * 1024)
        col1 = Cg * (4 * itemsize + 4)   # phase 1: x,y double-buffered + f32 temp
        col2 = Cg * (6 * itemsize + 8)   # phase 2: x,y,out double-buffered + f32 temps
        hw_g128 = _round_up(hw_g, 128)
        if hw_tile is not None:
            t1 = t2 = max(128, (int(hw_tile) // 128) * 128)
        else:
            t1 = max(128, (phase_budget // col1) // 128 * 128)
            t2 = max(128, (phase_budget // col2) // 128 * 128)
        t2 = min(t2, hw_g128)
        t1 = min(max(t1, t2), hw_g128)
        t1 = max(t2, (t1 // t2) * t2)    # phase-1 tile = integer multiple of t2

        # Zero-pad the folded lane dim so both phases tile it exactly (no
        # fallback to a giant single block for non-divisible shapes).
        hw_gp = _round_up(hw_g, t1)
        if hw_gp != hw_g:
            x2p = jnp.pad(x2, ((0, 0), (0, hw_gp - hw_g)))
            y2p = jnp.pad(y2, ((0, 0), (0, hw_gp - hw_g)))
        else:
            x2p, y2p = x2, y2
        n1 = hw_gp // t1
        n2 = hw_gp // t2
        P = 2 if (n1 >= 2 and n1 % 2 == 0) else 1   # v7x: split phase 1 over both TCs
        n1p = n1 // P
        tp_vmem_limit = min(int(0.5 * vmem_cap), 40 * 1024 * 1024)

        # Phase 1: streaming partial GAP sums.
        partial = pl.pallas_call(
            _gap_kernel,
            out_shape=jax.ShapeDtypeStruct((P, Cg, 1), jnp.float32),
            grid=(P, n1p),
            in_specs=[
                pl.BlockSpec((Cg, t1), lambda p, i: (0, p * n1p + i)),
                pl.BlockSpec((Cg, t1), lambda p, i: (0, p * n1p + i)),
            ],
            out_specs=pl.BlockSpec((1, Cg, 1), lambda p, i: (p, 0, 0)),
            compiler_params=pltpu.CompilerParams(
                dimension_semantics=("parallel", "arbitrary"),
                vmem_limit_bytes=tp_vmem_limit),
        )(x2p, y2p)

        # Tiny O(C^2) attention mat-vec + 2-way softmax in plain XLA.
        s_g = jnp.sum(partial, axis=0)                           # (Cg, 1)
        logits = jnp.dot(w_gg, s_g * inv_hw,
                         precision=jax.lax.Precision.HIGHEST) + b_gg
        att0 = jax.nn.sigmoid(logits[:Cg] - logits[Cg:])         # (Cg, 1) f32

        # Phase 2: streaming blend over independent spatial tiles.
        # TODO(synk): if shape constraints force t2 down to 128-512, deepen the
        # x/y pipeline with pipeline_mode=pl.Buffered(3) and sweep 2 vs 3.
        out2 = pl.pallas_call(
            _blend_kernel,
            out_shape=jax.ShapeDtypeStruct((Cg, hw_gp), dt),
            grid=(n2,),
            in_specs=[
                pl.BlockSpec((Cg, 1), lambda i: (0, 0)),
                pl.BlockSpec((Cg, t2), lambda i: (0, i)),
                pl.BlockSpec((Cg, t2), lambda i: (0, i)),
            ],
            out_specs=pl.BlockSpec((Cg, t2), lambda i: (0, i)),
            compiler_params=pltpu.CompilerParams(
                dimension_semantics=("parallel",),
                vmem_limit_bytes=tp_vmem_limit),
        )(att0, x2p, y2p)
        if hw_gp != hw_g:
            out2 = out2[:, :hw_g]

    # Unfold: (Cg, hw_g) -> (C, hw_al) is a pure reshape; drop the pad.
    out_flat = out2.reshape(C, hw_al)
    if hw_al != hw:
        out_flat = out_flat[:, :hw]
    return out_flat.reshape(1, C, H, W)


# ----------------------------------------------------------------------------
# Pure-JAX reference mirroring the PyTorch forward (batch=1).
# ----------------------------------------------------------------------------
def skconv_reference(x, y, w_fc, b_fc, w_fcs, b_fcs):
    M = w_fcs.shape[0]
    hi = jax.lax.Precision.HIGHEST
    feas = jnp.stack([x, y], axis=1)                         # (1, M, C, H, W)
    fea_U = jnp.sum(feas, axis=1)                            # (1, C, H, W)
    fea_s = jnp.mean(fea_U, axis=(2, 3))                     # (1, C)
    fea_z = jnp.matmul(fea_s, w_fc.T, precision=hi) + b_fc   # (1, d)
    vecs = jnp.stack(
        [jnp.matmul(fea_z, w_fcs[m].T, precision=hi) + b_fcs[m] for m in range(M)],
        axis=1)                                              # (1, M, C)
    att = jax.nn.softmax(vecs, axis=1)[..., None, None]      # (1, M, C, 1, 1)
    return jnp.sum(feas * att, axis=1)                       # (1, C, H, W)


if __name__ == "__main__":
    # SKConv(features=4, WH=16, M=2, G=1, r=2, L=32)  ->  d = max(4 // 2, 32) = 32
    features, M, r, L = 4, 2, 2, 32
    d = max(int(features / r), L)
    C = features

    key = jax.random.PRNGKey(0)
    kx, ky, kw1, kb1, kw2, kb2 = jax.random.split(key, 6)

    # Synthetic parameters; shapes follow the nn.Linear layers in __init__.
    w_fc = jax.random.normal(kw1, (d, C), dtype=jnp.float32) * 0.1
    b_fc = jax.random.normal(kb1, (d,), dtype=jnp.float32) * 0.1
    w_fcs = jax.random.normal(kw2, (M, C, d), dtype=jnp.float32) * 0.1
    b_fcs = jax.random.normal(kb2, (M, C), dtype=jnp.float32) * 0.1
    # TODO(synk): self.convs / self.conv / BatchNorm are never used by forward(),
    # so they are not materialized.

    # Case 1: fused single-block path (what this size actually uses), 16x16.
    x = jax.random.normal(kx, (1, C, 16, 16), dtype=jnp.float32)
    y = jax.random.normal(ky, (1, C, 16, 16), dtype=jnp.float32)
    out = jax.block_until_ready(skconv_forward(x, y, w_fc, b_fc, w_fcs, b_fcs))
    ref = skconv_reference(x, y, w_fc, b_fc, w_fcs, b_fcs)
    assert out.shape == x.shape
    assert jnp.allclose(out, ref, atol=5e-4, rtol=5e-4), "fused kernel mismatch"

    # Case 2: fused path with a non-128-divisible spatial size (exercises the
    # zero-pad / sublane-fold / unfold plumbing).
    x17 = jax.random.normal(kx, (1, C, 17, 17), dtype=jnp.float32)
    y17 = jax.random.normal(ky, (1, C, 17, 17), dtype=jnp.float32)
    out17 = jax.block_until_ready(skconv_forward(x17, y17, w_fc, b_fc, w_fcs, b_fcs))
    ref17 = skconv_reference(x17, y17, w_fc, b_fc, w_fcs, b_fcs)
    assert jnp.allclose(out17, ref17, atol=5e-4, rtol=5e-4), "padded fused mismatch"

    # Case 3: forced two-phase tiled pipeline (what large inputs use), with a
    # 128-lane tile so the multi-step GAP accumulation and the 2-way
    # "parallel" phase-1 split are exercised.
    x32 = jax.random.normal(kx, (1, C, 32, 32), dtype=jnp.float32)
    y32 = jax.random.normal(ky, (1, C, 32, 32), dtype=jnp.float32)
    out32 = jax.block_until_ready(
        skconv_forward(x32, y32, w_fc, b_fc, w_fcs, b_fcs,
                       force_two_phase=True, hw_tile=128))
    ref32 = skconv_reference(x32, y32, w_fc, b_fc, w_fcs, b_fcs)
    assert jnp.allclose(out32, ref32, atol=5e-4, rtol=5e-4), "tiled kernel mismatch"

    print("KERNEL_OK")
</pallas_src>

<mosaic_0001>
module attributes {stable_mosaic.version = 11 : i64} {
  func.func @_skconv_fused_kernel(%arg0: i32, %arg1: memref<8x128xf32, #tpu.memory_space<vmem>>, %arg2: memref<8x128xf32, #tpu.memory_space<vmem>>, %arg3: memref<16x8xf32, #tpu.memory_space<vmem>>, %arg4: memref<16x1xf32, #tpu.memory_space<vmem>>, %arg5: memref<8x128xf32, #tpu.memory_space<vmem>>) attributes {dimension_semantics = [#tpu.dimension_semantics<arbitrary>], iteration_bounds = array<i64: 1>, scalar_prefetch = 0 : i64, scratch_operands = 0 : i64, tpu.core_type = #tpu.core_type<tc>, window_params = [{pipeline_mode = #tpu.pipeline_mode<synchronous>, transform_indices = @transform_0, window_bounds = array<i64: 8, 128>}, {pipeline_mode = #tpu.pipeline_mode<synchronous>, transform_indices = @transform_1, window_bounds = array<i64: 8, 128>}, {pipeline_mode = #tpu.pipeline_mode<synchronous>, transform_indices = @transform_2, window_bounds = array<i64: 16, 8>}, {pipeline_mode = #tpu.pipeline_mode<synchronous>, transform_indices = @transform_3, window_bounds = array<i64: 16, 1>}, {pipeline_mode = #tpu.pipeline_mode<synchronous>, transform_indices = @transform_4, window_bounds = array<i64: 8, 128>}]} {
    %c0 = arith.constant 0 : index
    %c0_0 = arith.constant 0 : index
    %0 = vector.load %arg1[%c0, %c0_0] : memref<8x128xf32, #tpu.memory_space<vmem>>, vector<8x128xf32>
    %c0_1 = arith.constant 0 : index
    %c0_2 = arith.constant 0 : index
    %1 = vector.load %arg2[%c0_1, %c0_2] : memref<8x128xf32, #tpu.memory_space<vmem>>, vector<8x128xf32>
    %2 = arith.addf %0, %1 : vector<8x128xf32>
    %cst = arith.constant dense<0.000000e+00> : vector<8xf32>
    %3 = vector.multi_reduction <add>, %2, %cst [1] : vector<8x128xf32> to vector<8xf32>
    %4 = vector.shape_cast %3 : vector<8xf32> to vector<8x1xf32>
    %c0_3 = arith.constant 0 : index
    %c0_4 = arith.constant 0 : index
    %5 = vector.load %arg3[%c0_3, %c0_4] : memref<16x8xf32, #tpu.memory_space<vmem>>, vector<16x8xf32>
    %c0_5 = arith.constant 0 : index
    %c0_6 = arith.constant 0 : index
    %6 = vector.load %arg4[%c0_5, %c0_6] : memref<16x1xf32, #tpu.memory_space<vmem>>, vector<16x1xf32>
    %cst_7 = arith.constant 3.906250e-03 : f32
    %7 = vector.broadcast %cst_7 : f32 to vector<8x1xf32>
    %8 = arith.mulf %4, %7 : vector<8x1xf32>
    %9 = vector.shape_cast %8 : vector<8x1xf32> to vector<8x1xf32>
    %10 = vector.broadcast %9 : vector<8x1xf32> to vector<8x128xf32>
    %cst_8 = arith.constant dense<0.000000e+00> : vector<16x128xf32>
    %11 = tpu.matmul %5, %10, %cst_8 {dimension_numbers = #tpu.dot_dimension_numbers<[1], [0], [0], [1], [0, 0, 1, 1], [], []>} : vector<16x8xf32>, vector<8x128xf32>, vector<16x128xf32> -> vector<16x128xf32>
    %12 = vector.extract_strided_slice %11 {offsets = [0, 0], sizes = [16, 1], strides = [1, 1]} : vector<16x128xf32> to vector<16x1xf32>
    %13 = arith.addf %12, %6 : vector<16x1xf32>
    %14 = vector.extract_strided_slice %13 {offsets = [0, 0], sizes = [8, 1], strides = [1, 1]} : vector<16x1xf32> to vector<8x1xf32>
    %15 = vector.extract_strided_slice %13 {offsets = [8, 0], sizes = [8, 1], strides = [1, 1]} : vector<16x1xf32> to vector<8x1xf32>
    %16 = arith.maximumf %14, %15 : vector<8x1xf32>
    %17 = arith.subf %14, %16 : vector<8x1xf32>
    %18 = math.exp %17 : vector<8x1xf32>
    %19 = arith.subf %15, %16 : vector<8x1xf32>
    %20 = math.exp %19 : vector<8x1xf32>
    %21 = arith.addf %18, %20 : vector<8x1xf32>
    %22 = arith.divf %18, %21 : vector<8x1xf32>
    %23 = arith.subf %0, %1 : vector<8x128xf32>
    %24 = vector.broadcast %22 : vector<8x1xf32> to vector<8x128xf32>
    %25 = arith.mulf %24, %23 : vector<8x128xf32>
    %26 = arith.addf %1, %25 : vector<8x128xf32>
    %c0_9 = arith.constant 0 : index
    %c0_10 = arith.constant 0 : index
    %27 = vector.load %arg5[%c0_9, %c0_10] : memref<8x128xf32, #tpu.memory_space<vmem>>, vector<8x128xf32>
    tpu.vector_store %arg5[%c0_9, %c0_10], %26 {strides = array<i32>} : memref<8x128xf32, #tpu.memory_space<vmem>>, vector<8x128xf32>,
    return
  }
  func.func @transform_0(%arg0: i32) -> (i32, i32) {
    %c0_i32 = arith.constant 0 : i32
    %c0_i32_0 = arith.constant 0 : i32
    %c0_i32_1 = arith.constant 0 : i32
    return %c0_i32, %c0_i32_0 : i32, i32
  }
  func.func @transform_1(%arg0: i32) -> (i32, i32) {
    %c0_i32 = arith.constant 0 : i32
    %c0_i32_0 = arith.constant 0 : i32
    %c0_i32_1 = arith.constant 0 : i32
    return %c0_i32, %c0_i32_0 : i32, i32
  }
  func.func @transform_2(%arg0: i32) -> (i32, i32) {
    %c0_i32 = arith.constant 0 : i32
    %c0_i32_0 = arith.constant 0 : i32
    %c0_i32_1 = arith.constant 0 : i32
    return %c0_i32, %c0_i32_0 : i32, i32
  }
  func.func @transform_3(%arg0: i32) -> (i32, i32) {
    %c0_i32 = arith.constant 0 : i32
    %c0_i32_0 = arith.constant 0 : i32
    %c0_i32_1 = arith.constant 0 : i32
    return %c0_i32, %c0_i32_0 : i32, i32
  }
  func.func @transform_4(%arg0: i32) -> (i32, i32) {
    %c0_i32 = arith.constant 0 : i32
    %c0_i32_0 = arith.constant 0 : i32
    %c0_i32_1 = arith.constant 0 : i32
    return %c0_i32, %c0_i32_0 : i32, i32
  }
}

</mosaic_0001>

<bundles_post_ra>
// kernel: tpu_custom_call.1
= control target key start
LH: loop header
LB: loop body
LE: loop exit
PB: predicated region body
PF: predicated region fallthrough
CT: control target
= control target key end

     0   :  { %s234_s0 = inlined_call_operand.vmem [shape: f32[8,128], index: 0, kind: input, shape index: {}]   ;;  %s235_s1 = inlined_call_operand.vmem [shape: f32[8,128], index: 1, kind: input, shape index: {}]   ;;  %s236_s2 = inlined_call_operand.vmem [shape: f32[16,8], index: 2, kind: input, shape index: {}]   ;;  %s237_s3 = inlined_call_operand.vmem [shape: f32[16,1], index: 3, kind: input, shape index: {}]   ;;  %s238_s4 = inlined_call_operand.hbm [shape: f32[8,128], index: 4, kind: output, shape index: {}]  }
   0x1   :  { %v18_v0 = vld [vmem:[%s234_s0] sm:$0xff] }
   0x2   :  { %v19_v1 = vld [vmem:[%s235_s1] sm:$0xff] }
   0x3   :  { %9 = vsyncpa [#allocation3], 0  ;;  %v20_v2 = vadd.f32 %v19_v1, %v18_v0  ;;  %v23_v3 = vld [vmem:[%s236_s2] sm:$0xff]  ;;  %vm28_vm0 = vcmask 64512   ;;  %v24_v6 = vld [vmem:[%s236_s2 + $0x8] sm:$0xff]  ;;  %v186_v7 = vmov 0   ;;  %v122_v24 = vsub.f32 %v18_v0, %v19_v1 }
   0x4   :  { %152 = vmatprep.mubr.msk.f32.mxu0 %vm28_vm0, %v23_v3  ;;  %157 = vset.pattern.permute.xlu0 %v186_v7  ;;  %v26_v8 = vld [vmem:[%s237_s3 + $0x8] sm:$0xff]  ;;  %v25_v10 = vld [vmem:[%s237_s3] sm:$0xff]  ;;  %s187_s2 = smov [#allocation2]  }
   0x5   :  { %21 = vadd.xlane.f32.xlu0 %v20_v2  ;;  %s137_s3 = sshll.u32 %s187_s2, 4  ;;  %s138_s3 = int_to_ptr.vmem [resolvable:$true] %s137_s3 }
   0x6   :  { %s164_s25 = scalar_lea.vmem %s138_s3, 128  ;;  %p169_p1 = scmp.lt.s32.totalorder %s138_s3, %s138_s3 }
   0x7   :  { %p165_p0 = scmp.ne.s32.totalorder %s138_s3, %s164_s25  ;;  %p170_p2 = scmp.lt.s32.totalorder %s164_s25, %s164_s25 }
   0x9   :  { %p171_p3 = por %p170_p2, %p169_p1 }
   0xb   :  { %p172_p4 = pnand %p171_p3, %p165_p0 }
  0x8e   :  { %v22_v4 = vpop.xlane.xlu0 %21 }
  0x8f   :  { %v27_v5 = vmul.f32 0.00390625, %v22_v4 }
  0x91   :  { %150 = vmatprep.subr.mxu0 %v27_v5 }
  0x92   :  { %151 = vmatpush3.msra.mxu0 %v27_v5 }
  0x93   :  { %153 = vmatmul.mubr.msk.f32.vlgmr.msra.gmra.mxu0 %vm28_vm0, %v24_v6 }
 0x153   :  { %v154_v9 = vpop.f32.mrf.mxu0 }
 0x154   :  { %v111_v12 = vadd.f32 %v154_v9, %v26_v8 }
 0x155   :  { %v101_v11 = vpop.f32.mrf.mxu0 }
 0x156   :  { %v110_v13 = vadd.f32 %v101_v11, %v25_v10 }
 0x158   :  { %v112_v14 = vmax.f32 %v110_v13, %v111_v12 }
 0x15a   :  { %v113_v15 = vsub.f32 %v110_v13, %v112_v14  ;;  %v116_v16 = vsub.f32 %v111_v12, %v112_v14 }
 0x15c   :  { %v114_v17 = vmul.f32 1.442695, %v113_v15  ;;  %v117_v18 = vmul.f32 1.442695, %v116_v16 }
 0x15e   :  { %158 = vpow2.f32 %v114_v17 }
 0x15f   :  { %160 = vpow2.f32 %v117_v18 }
 0x16b   :  { %v159_v19 = vpop.eup %158 }
 0x16c   :  { %v161_v20 = vpop.eup %160 }
 0x16d   :  { %v119_v21 = vadd.f32 %v161_v20, %v159_v19 }
 0x16f   :  { %162 = vrcp.f32 %v119_v21 }
 0x17c   :  { %v163_v22 = vpop.eup %162 }
 0x17d   :  { %v121_v23 = vmul.f32 %v163_v22, %v159_v19 }
 0x17f   :  { %125 = vperm.xlu0 %157, %v121_v23  }
 0x1fa   :  { %v126_v25 = vpop.permute.xlu0 %125 }
 0x1fb   :  { %v128_v26 = vmul.f32 %v126_v25, %v122_v24 }
 0x1fd   :  { %v129_v27 = vadd.f32 %v128_v26, %v19_v1 }
 0x1ff   :  { %130 = vst [vmem:[#allocation2] sm:$0xff] %v129_v27 }
 0x200   :  { %175 = shalt.err (!%p172_p4)
}
 0x201   :  { %140 = dma.vmem_to_hbm [thread:$0]  %s138_s3, 128, %s238_s4, [#allocation3]  }
 0x202   :  { %184 = dma.done.wait [#allocation3], 128  }
 0x203   :  { %185 = vsyncadd [#allocation3], 4294967168 }
 0x204   :  { %144 = vsyncpa [#allocation3], 1 }

</bundles_post_ra>
